<compile_context>
chip_gen: v7x
topology: tpu7x:2x2x1
jax: 0.10.0
libtpu: 0.0.40
codegen_flags: <defaults>
</compile_context>

<pallas_src>
import functools
import math

import jax
import jax.numpy as jnp
from jax import lax
from jax.experimental import pallas as pl
from jax.experimental.pallas import tpu as pltpu

EPS_CLAMP = 1.19e-07
BN_EPS = 1e-5

_LANCZOS_G = 7.0
_LANCZOS_C0 = 0.99999999999980993
_LANCZOS_COEFS = (
    676.5203681218851, -1259.1392167224028, 771.32342877765313,
    -176.61502916214059, 12.507343278686905, -0.13857109526572012,
    9.9843695780195716e-6, 1.5056327351493116e-7,
)


def _lgamma_pos(z):
    """log Gamma(z) for z > 0, elementwise only (Lanczos g=7).

    Shift z by +2 so the series is well inside its valid range, then remove
    the shift with lgamma(z) = lgamma(z+2) - log(z*(z+1)).
    The per-term divides use the EUP approx reciprocal (vrcp, ~2^-12 rel err);
    the 8 independent terms are combined with a tree add so the dependent VALU
    latency is depth-3 instead of depth-8 (the tail is latency-bound at small
    vreg counts).
    """
    zz = z + 1.0  # = (z + 2) - 1
    r = [c * pl.reciprocal(zz + float(i + 1), approx=True)
         for i, c in enumerate(_LANCZOS_COEFS)]
    s01, s23 = r[0] + r[1], r[2] + r[3]
    s45, s67 = r[4] + r[5], r[6] + r[7]
    a = _LANCZOS_C0 + ((s01 + s23) + (s45 + s67))
    t = zz + _LANCZOS_G + 0.5
    lg_shift = (0.5 * jnp.log(2.0 * jnp.pi)
                + (zz + 0.5) * jnp.log(t) - t + jnp.log(a))
    return lg_shift - jnp.log(z * (z + 1.0))


def _softplus(x):
    # torch.nn.Softplus(beta=1, threshold=20)
    return jnp.where(x > 20.0, x, jnp.log1p(jnp.exp(jnp.minimum(x, 20.0))))


def _batchnorm_train(h, gamma, beta):
    """BatchNorm1d (training mode), fused one-pass stats + folded affine.

    sum(h) and sum(h*h) are computed together (independent reductions, no
    centered temporary); var = E[h^2] - mean^2 (biased), clamped at 0.
    The normalize + affine is folded to scale/shift so the per-element cost is
    one mul + one add (no f32 FMA on current TPU VPUs).
    """
    inv_n = 1.0 / float(h.shape[0])
    s = jnp.sum(h, axis=0, keepdims=True)
    ss = jnp.sum(h * h, axis=0, keepdims=True)
    mu = s * inv_n
    var = jnp.maximum(ss * inv_n - mu * mu, 0.0)
    scale = gamma * lax.rsqrt(var + BN_EPS)           # (1, H1)
    shift = beta - mu * scale                         # (1, H1)
    return h * scale + shift


def _beta_kernel(num_hidden,
                 x_ref, y_ref,
                 w1_ref, b1_ref, g1_ref, be1_ref,
                 wh_ref, bh_ref, gh_ref, beh_ref,
                 w3t_ref, b3t_ref,
                 kt_ref, loss_ref):
    x = x_ref[...]                                               # (N, D_in)

    # Layer 1: Linear -> BatchNorm -> ReLU
    h = jnp.dot(x, w1_ref[...], preferred_element_type=jnp.float32) + b1_ref[...]
    h = jnp.maximum(_batchnorm_train(h, g1_ref[...], be1_ref[...]), 0.0)

    # Hidden layers (static unroll)
    for i in range(num_hidden):
        h = jnp.dot(h, wh_ref[i], preferred_element_type=jnp.float32) + bh_ref[i]
        h = jnp.maximum(_batchnorm_train(h, gh_ref[i], beh_ref[i]), 0.0)

    # Output head, TRANSPOSED so the batch lands on lanes: contract H1 of
    # w3t (2, H1) with H1 of h (N, H1)  ->  (2, N).
    out_t = lax.dot_general(
        w3t_ref[...], h,
        dimension_numbers=(((1,), (1,)), ((), ())),
        preferred_element_type=jnp.float32) + b3t_ref[...]      # (2, N)

    # Softplus + clamp once on the whole lane-dense (2, N).
    kt = jnp.maximum(_softplus(out_t), EPS_CLAMP)                # rows = [k, theta]
    kt_ref[...] = kt                                             # lane-dense store

    k = kt[0:1, :]                                               # (1, N)
    th = kt[1:2, :]                                              # (1, N)

    yc = jnp.clip(y_ref[...], EPS_CLAMP, 1.0 - EPS_CLAMP)        # (1, N)

    # Single lgamma call on lane-packed [k; theta; k+theta]  ->  (3, N).
    lg = _lgamma_pos(jnp.concatenate([kt, k + th], axis=0))
    log_prob = ((k - 1.0) * jnp.log(yc)
                + (th - 1.0) * jnp.log1p(-yc)
                + lg[2:3, :] - lg[0:1, :] - lg[1:2, :])          # (1, N)

    n_elems = float(log_prob.shape[0] * log_prob.shape[1])
    # Keep the scalar loss as a (1,1) VMEM tile (known-good lowering for a
    # full reduction).
    loss_ref[...] = -(jnp.sum(log_prob, keepdims=True) / n_elems)


def _physical_vmem_bytes():
    try:
        info = pltpu.get_tpu_info()
        return int(getattr(info, "vmem_capacity_bytes", 64 << 20))
    except Exception:
        return 64 << 20   # conservative (v7x per-TC size)


def _vmem_limit_bytes(n, d_in, h1, num_hidden):
    # A handful of live (N, H1) f32 temporaries + weights + I/O, plus headroom.
    acts = 8 * n * max(h1, d_in) * 4
    weights = (d_in * h1 + num_hidden * h1 * h1 + 2 * h1) * 4
    bn = 4 * h1 * (1 + num_hidden) * 4
    io = (n * (d_in + 1 + 2) + 1) * 4
    total = acts + weights + bn + io + (4 << 20)
    # Cap at 7/8 of the chip's physical VMEM (leaves headroom for internal
    # scratch / double buffers): ~56 MiB on v7x, ~112 MiB on v5e/v6e.
    cap = (_physical_vmem_bytes() * 7) // 8
    return int(min(max(total, 32 << 20), cap))


def _cost_estimate(n, d_in, h1, num_hidden):
    matmul_flops = 2 * n * (d_in * h1 + num_hidden * h1 * h1 + 2 * h1)
    bn_relu_flops = 8 * n * h1 * (num_hidden + 1)
    tail_flops = 80 * n
    # lgamma: ~11 transcendental-class ops per element on (3, N); softplus
    # exp+log1p on (2, N); two logs on y.
    transcendentals = n * (3 * 11 + 2 * 2 + 2)
    bytes_accessed = 4 * (n * (d_in + 1 + 2) + 1
                          + d_in * h1 + num_hidden * h1 * h1 + 2 * h1
                          + 2 * h1 * (1 + num_hidden) * 2)
    return pl.CostEstimate(flops=int(matmul_flops + bn_relu_flops + tail_flops),
                           transcendentals=int(transcendentals),
                           bytes_accessed=int(bytes_accessed))


def beta_forward(x, params, dim):
    """Returns ((k, theta), loss) — (k, theta) parameterize the Beta distribution."""
    n, f = x.shape
    keep = jnp.array([i for i in range(f) if i != dim], dtype=jnp.int32)

    # --- plain-JAX glue: column select + embedding gather + concat ---
    y = x[:, dim]
    xr = x[:, keep]                                   # (N, F-1)
    loc_idx = xr[:, -1].astype(jnp.int32)
    emb = params["emb"][loc_idx]                      # (N, E)
    x_feat = jnp.concatenate([xr[:, :-1], emb], axis=1).astype(jnp.float32)
    y_row = y.reshape(1, n).astype(jnp.float32)       # batch on lanes

    num_hidden = params["wh"].shape[0]
    d_in = x_feat.shape[1]
    h1 = params["w1"].shape[1]

    # Head weights pre-transposed so the kernel emits a (2, N) lane-dense head.
    w3_t = jnp.transpose(params["w3"])                # (2, H1)
    b3_t = params["b3"].reshape(2, 1)                 # (2, 1)

    kernel = functools.partial(_beta_kernel, num_hidden)
    vmem = pl.BlockSpec(memory_space=pltpu.MemorySpace.VMEM)

    kt, loss = pl.pallas_call(
        kernel,
        out_shape=(
            jax.ShapeDtypeStruct((2, n), jnp.float32),   # rows = [k, theta], lane-dense
            jax.ShapeDtypeStruct((1, 1), jnp.float32),   # mean negative log-prob
        ),
        in_specs=[vmem] * 12,
        out_specs=(vmem, vmem),
        compiler_params=pltpu.CompilerParams(
            vmem_limit_bytes=_vmem_limit_bytes(n, d_in, h1, num_hidden)),
        cost_estimate=_cost_estimate(n, d_in, h1, num_hidden),
    )(x_feat, y_row,
      params["w1"], params["b1"], params["g1"], params["be1"],
      params["wh"], params["bh"], params["gh"], params["beh"],
      w3_t, b3_t)

    return (kt[0], kt[1]), loss[0, 0]


def init_params(key, d_in, h1, layer, loc_embedding):
    num_hidden = layer - 1
    ks = jax.random.split(key, 4)

    def linear(k, fan_in, fan_out):
        bound = 1.0 / math.sqrt(fan_in)
        kw, kb = jax.random.split(k)
        w = jax.random.uniform(kw, (fan_in, fan_out), jnp.float32, -bound, bound)
        b = jax.random.uniform(kb, (1, fan_out), jnp.float32, -bound, bound)
        return w, b

    w1, b1 = linear(ks[0], d_in, h1)
    wh_list, bh_list = [], []
    for i in range(num_hidden):
        w, b = linear(jax.random.fold_in(ks[1], i), h1, h1)
        wh_list.append(w)
        bh_list.append(b)
    wh = jnp.stack(wh_list)                            # (L-1, H1, H1)
    bh = jnp.stack(bh_list)                            # (L-1, 1, H1)
    w3, b3 = linear(ks[2], h1, 2)
    emb = jax.random.normal(ks[3], (252, loc_embedding), jnp.float32)

    return dict(
        w1=w1, b1=b1,
        g1=jnp.ones((1, h1), jnp.float32), be1=jnp.zeros((1, h1), jnp.float32),
        wh=wh, bh=bh,
        gh=jnp.ones((num_hidden, 1, h1), jnp.float32),
        beh=jnp.zeros((num_hidden, 1, h1), jnp.float32),
        w3=w3, b3=b3, emb=emb,
    )


def ref_forward(x, params, dim):
    """Pure-JAX reference for a sanity check."""
    from jax.scipy.special import gammaln
    n, f = x.shape
    keep = jnp.array([i for i in range(f) if i != dim], dtype=jnp.int32)
    y = x[:, dim]
    xr = x[:, keep]
    emb = params["emb"][xr[:, -1].astype(jnp.int32)]
    h = jnp.concatenate([xr[:, :-1], emb], axis=1).astype(jnp.float32)

    def bn(h):
        mu = jnp.mean(h, axis=0, keepdims=True)
        var = jnp.mean((h - mu) ** 2, axis=0, keepdims=True)
        return (h - mu) / jnp.sqrt(var + BN_EPS)

    h = jnp.maximum(bn(h @ params["w1"] + params["b1"]), 0.0)
    for i in range(params["wh"].shape[0]):
        h = jnp.maximum(bn(h @ params["wh"][i] + params["bh"][i]), 0.0)
    out = h @ params["w3"] + params["b3"]
    sp = lambda v: jnp.where(v > 20.0, v, jnp.log1p(jnp.exp(jnp.minimum(v, 20.0))))
    k = jnp.maximum(sp(out[:, 0]), EPS_CLAMP)
    th = jnp.maximum(sp(out[:, 1]), EPS_CLAMP)
    yc = jnp.clip(y, EPS_CLAMP, 1.0 - EPS_CLAMP)
    lp = ((k - 1.0) * jnp.log(yc) + (th - 1.0) * jnp.log(1.0 - yc)
          + gammaln(k + th) - gammaln(k) - gammaln(th))
    return (k, th), -jnp.mean(lp)


if __name__ == "__main__":
    # Small, module-consistent shapes:
    #   raw input x: (N=8, F=8) columns; dim=3 is the Beta target y in (0, 1);
    #   last column holds location indices in [0, 252); other 6 cols are features.
    #   D_in = (F - 2) + loc_embedding = 6 + 4 = 10, H1 = 32, layer = 3.
    N, F, dim = 8, 8, 3
    loc_embedding, H1, layer = 4, 32, 3
    D_in = (F - 2) + loc_embedding

    kp, kx, ky, kloc = jax.random.split(jax.random.PRNGKey(0), 4)
    params = init_params(kp, D_in, H1, layer, loc_embedding)

    x = jax.random.normal(kx, (N, F), jnp.float32)
    x = x.at[:, dim].set(jax.random.uniform(ky, (N,), jnp.float32, 0.01, 0.99))
    x = x.at[:, F - 1].set(
        jax.random.randint(kloc, (N,), 0, 252).astype(jnp.float32))

    (k, theta), loss = beta_forward(x, params, dim)
    jax.block_until_ready((k, theta, loss))

    # Sanity check against the plain-JAX reference (loose tolerance: MXU matmul
    # precision + Lanczos-with-approx-reciprocal lgamma vs gammaln).
    (k_r, th_r), loss_r = ref_forward(x, params, dim)
    assert bool(jnp.all(jnp.isfinite(k)) & jnp.all(jnp.isfinite(theta))
                & jnp.isfinite(loss))
    assert jnp.allclose(k, k_r, rtol=5e-2, atol=1e-2)
    assert jnp.allclose(theta, th_r, rtol=5e-2, atol=1e-2)
    assert jnp.allclose(loss, loss_r, rtol=5e-2, atol=2e-2)

    print("KERNEL_OK")
</pallas_src>

<mosaic_0001>
module attributes {stable_mosaic.version = 11 : i64} {
  func.func @_beta_kernel(%arg0: memref<8x10xf32, #tpu.memory_space<vmem>>, %arg1: memref<1x8xf32, #tpu.memory_space<vmem>>, %arg2: memref<10x32xf32, #tpu.memory_space<vmem>>, %arg3: memref<1x32xf32, #tpu.memory_space<vmem>>, %arg4: memref<1x32xf32, #tpu.memory_space<vmem>>, %arg5: memref<1x32xf32, #tpu.memory_space<vmem>>, %arg6: memref<2x32x32xf32, #tpu.memory_space<vmem>>, %arg7: memref<2x1x32xf32, #tpu.memory_space<vmem>>, %arg8: memref<2x1x32xf32, #tpu.memory_space<vmem>>, %arg9: memref<2x1x32xf32, #tpu.memory_space<vmem>>, %arg10: memref<2x32xf32, #tpu.memory_space<vmem>>, %arg11: memref<2x1xf32, #tpu.memory_space<vmem>>, %arg12: memref<2x8xf32, #tpu.memory_space<vmem>>, %arg13: memref<1x1xf32, #tpu.memory_space<vmem>>) attributes {dimension_semantics = [], scalar_prefetch = 0 : i64, scratch_operands = 0 : i64, tpu.core_type = #tpu.core_type<tc>} {
    %c0 = arith.constant 0 : index
    %c0_0 = arith.constant 0 : index
    %0 = vector.load %arg0[%c0, %c0_0] : memref<8x10xf32, #tpu.memory_space<vmem>>, vector<8x10xf32>
    %c0_1 = arith.constant 0 : index
    %c0_2 = arith.constant 0 : index
    %1 = vector.load %arg2[%c0_1, %c0_2] : memref<10x32xf32, #tpu.memory_space<vmem>>, vector<10x32xf32>
    %cst = arith.constant dense<0.000000e+00> : vector<8x32xf32>
    %2 = tpu.matmul %0, %1, %cst {dimension_numbers = #tpu.dot_dimension_numbers<[1], [0], [0], [1], [0, 0, 1, 1], [], []>} : vector<8x10xf32>, vector<10x32xf32>, vector<8x32xf32> -> vector<8x32xf32>
    %c0_3 = arith.constant 0 : index
    %c0_4 = arith.constant 0 : index
    %3 = vector.load %arg3[%c0_3, %c0_4] : memref<1x32xf32, #tpu.memory_space<vmem>>, vector<1x32xf32>
    %4 = vector.broadcast %3 : vector<1x32xf32> to vector<8x32xf32>
    %5 = arith.addf %2, %4 : vector<8x32xf32>
    %c0_5 = arith.constant 0 : index
    %c0_6 = arith.constant 0 : index
    %6 = vector.load %arg4[%c0_5, %c0_6] : memref<1x32xf32, #tpu.memory_space<vmem>>, vector<1x32xf32>
    %c0_7 = arith.constant 0 : index
    %c0_8 = arith.constant 0 : index
    %7 = vector.load %arg5[%c0_7, %c0_8] : memref<1x32xf32, #tpu.memory_space<vmem>>, vector<1x32xf32>
    %cst_9 = arith.constant dense<0.000000e+00> : vector<32xf32>
    %8 = vector.multi_reduction <add>, %5, %cst_9 [0] : vector<8x32xf32> to vector<32xf32>
    %9 = vector.shape_cast %8 : vector<32xf32> to vector<1x32xf32>
    %10 = arith.mulf %5, %5 : vector<8x32xf32>
    %cst_10 = arith.constant dense<0.000000e+00> : vector<32xf32>
    %11 = vector.multi_reduction <add>, %10, %cst_10 [0] : vector<8x32xf32> to vector<32xf32>
    %12 = vector.shape_cast %11 : vector<32xf32> to vector<1x32xf32>
    %cst_11 = arith.constant 1.250000e-01 : f32
    %13 = vector.broadcast %cst_11 : f32 to vector<1x32xf32>
    %14 = arith.mulf %9, %13 : vector<1x32xf32>
    %cst_12 = arith.constant 1.250000e-01 : f32
    %15 = vector.broadcast %cst_12 : f32 to vector<1x32xf32>
    %16 = arith.mulf %12, %15 : vector<1x32xf32>
    %17 = arith.mulf %14, %14 : vector<1x32xf32>
    %18 = arith.subf %16, %17 : vector<1x32xf32>
    %cst_13 = arith.constant 0.000000e+00 : f32
    %19 = vector.broadcast %cst_13 : f32 to vector<1x32xf32>
    %20 = arith.maximumf %18, %19 : vector<1x32xf32>
    %cst_14 = arith.constant 9.99999974E-6 : f32
    %21 = vector.broadcast %cst_14 : f32 to vector<1x32xf32>
    %22 = arith.addf %20, %21 : vector<1x32xf32>
    %23 = math.rsqrt %22 : vector<1x32xf32>
    %24 = arith.mulf %6, %23 : vector<1x32xf32>
    %25 = arith.mulf %14, %24 : vector<1x32xf32>
    %26 = arith.subf %7, %25 : vector<1x32xf32>
    %27 = vector.broadcast %24 : vector<1x32xf32> to vector<8x32xf32>
    %28 = arith.mulf %5, %27 : vector<8x32xf32>
    %29 = vector.broadcast %26 : vector<1x32xf32> to vector<8x32xf32>
    %30 = arith.addf %28, %29 : vector<8x32xf32>
    %cst_15 = arith.constant 0.000000e+00 : f32
    %31 = vector.broadcast %cst_15 : f32 to vector<8x32xf32>
    %32 = arith.maximumf %30, %31 : vector<8x32xf32>
    %c0_16 = arith.constant 0 : index
    %c0_17 = arith.constant 0 : index
    %c0_18 = arith.constant 0 : index
    %33 = vector.load %arg6[%c0_16, %c0_17, %c0_18] : memref<2x32x32xf32, #tpu.memory_space<vmem>>, vector<1x32x32xf32>
    %34 = vector.shape_cast %33 : vector<1x32x32xf32> to vector<32x32xf32>
    %cst_19 = arith.constant dense<0.000000e+00> : vector<8x32xf32>
    %35 = tpu.matmul %32, %34, %cst_19 {dimension_numbers = #tpu.dot_dimension_numbers<[1], [0], [0], [1], [0, 0, 1, 1], [], []>} : vector<8x32xf32>, vector<32x32xf32>, vector<8x32xf32> -> vector<8x32xf32>
    %c0_20 = arith.constant 0 : index
    %c0_21 = arith.constant 0 : index
    %c0_22 = arith.constant 0 : index
    %36 = vector.load %arg7[%c0_20, %c0_21, %c0_22] : memref<2x1x32xf32, #tpu.memory_space<vmem>>, vector<1x1x32xf32>
    %37 = vector.shape_cast %36 : vector<1x1x32xf32> to vector<1x32xf32>
    %38 = vector.broadcast %37 : vector<1x32xf32> to vector<8x32xf32>
    %39 = arith.addf %35, %38 : vector<8x32xf32>
    %c0_23 = arith.constant 0 : index
    %c0_24 = arith.constant 0 : index
    %c0_25 = arith.constant 0 : index
    %40 = vector.load %arg8[%c0_23, %c0_24, %c0_25] : memref<2x1x32xf32, #tpu.memory_space<vmem>>, vector<1x1x32xf32>
    %41 = vector.shape_cast %40 : vector<1x1x32xf32> to vector<1x32xf32>
    %c0_26 = arith.constant 0 : index
    %c0_27 = arith.constant 0 : index
    %c0_28 = arith.constant 0 : index
    %42 = vector.load %arg9[%c0_26, %c0_27, %c0_28] : memref<2x1x32xf32, #tpu.memory_space<vmem>>, vector<1x1x32xf32>
    %43 = vector.shape_cast %42 : vector<1x1x32xf32> to vector<1x32xf32>
    %cst_29 = arith.constant dense<0.000000e+00> : vector<32xf32>
    %44 = vector.multi_reduction <add>, %39, %cst_29 [0] : vector<8x32xf32> to vector<32xf32>
    %45 = vector.shape_cast %44 : vector<32xf32> to vector<1x32xf32>
    %46 = arith.mulf %39, %39 : vector<8x32xf32>
    %cst_30 = arith.constant dense<0.000000e+00> : vector<32xf32>
    %47 = vector.multi_reduction <add>, %46, %cst_30 [0] : vector<8x32xf32> to vector<32xf32>
    %48 = vector.shape_cast %47 : vector<32xf32> to vector<1x32xf32>
    %cst_31 = arith.constant 1.250000e-01 : f32
    %49 = vector.broadcast %cst_31 : f32 to vector<1x32xf32>
    %50 = arith.mulf %45, %49 : vector<1x32xf32>
    %cst_32 = arith.constant 1.250000e-01 : f32
    %51 = vector.broadcast %cst_32 : f32 to vector<1x32xf32>
    %52 = arith.mulf %48, %51 : vector<1x32xf32>
    %53 = arith.mulf %50, %50 : vector<1x32xf32>
    %54 = arith.subf %52, %53 : vector<1x32xf32>
    %cst_33 = arith.constant 0.000000e+00 : f32
    %55 = vector.broadcast %cst_33 : f32 to vector<1x32xf32>
    %56 = arith.maximumf %54, %55 : vector<1x32xf32>
    %cst_34 = arith.constant 9.99999974E-6 : f32
    %57 = vector.broadcast %cst_34 : f32 to vector<1x32xf32>
    %58 = arith.addf %56, %57 : vector<1x32xf32>
    %59 = math.rsqrt %58 : vector<1x32xf32>
    %60 = arith.mulf %41, %59 : vector<1x32xf32>
    %61 = arith.mulf %50, %60 : vector<1x32xf32>
    %62 = arith.subf %43, %61 : vector<1x32xf32>
    %63 = vector.broadcast %60 : vector<1x32xf32> to vector<8x32xf32>
    %64 = arith.mulf %39, %63 : vector<8x32xf32>
    %65 = vector.broadcast %62 : vector<1x32xf32> to vector<8x32xf32>
    %66 = arith.addf %64, %65 : vector<8x32xf32>
    %cst_35 = arith.constant 0.000000e+00 : f32
    %67 = vector.broadcast %cst_35 : f32 to vector<8x32xf32>
    %68 = arith.maximumf %66, %67 : vector<8x32xf32>
    %c1 = arith.constant 1 : index
    %c0_36 = arith.constant 0 : index
    %c0_37 = arith.constant 0 : index
    %69 = vector.load %arg6[%c1, %c0_36, %c0_37] : memref<2x32x32xf32, #tpu.memory_space<vmem>>, vector<1x32x32xf32>
    %70 = vector.shape_cast %69 : vector<1x32x32xf32> to vector<32x32xf32>
    %cst_38 = arith.constant dense<0.000000e+00> : vector<8x32xf32>
    %71 = tpu.matmul %68, %70, %cst_38 {dimension_numbers = #tpu.dot_dimension_numbers<[1], [0], [0], [1], [0, 0, 1, 1], [], []>} : vector<8x32xf32>, vector<32x32xf32>, vector<8x32xf32> -> vector<8x32xf32>
    %c1_39 = arith.constant 1 : index
    %c0_40 = arith.constant 0 : index
    %c0_41 = arith.constant 0 : index
    %72 = vector.load %arg7[%c1_39, %c0_40, %c0_41] : memref<2x1x32xf32, #tpu.memory_space<vmem>>, vector<1x1x32xf32>
    %73 = vector.shape_cast %72 : vector<1x1x32xf32> to vector<1x32xf32>
    %74 = vector.broadcast %73 : vector<1x32xf32> to vector<8x32xf32>
    %75 = arith.addf %71, %74 : vector<8x32xf32>
    %c1_42 = arith.constant 1 : index
    %c0_43 = arith.constant 0 : index
    %c0_44 = arith.constant 0 : index
    %76 = vector.load %arg8[%c1_42, %c0_43, %c0_44] : memref<2x1x32xf32, #tpu.memory_space<vmem>>, vector<1x1x32xf32>
    %77 = vector.shape_cast %76 : vector<1x1x32xf32> to vector<1x32xf32>
    %c1_45 = arith.constant 1 : index
    %c0_46 = arith.constant 0 : index
    %c0_47 = arith.constant 0 : index
    %78 = vector.load %arg9[%c1_45, %c0_46, %c0_47] : memref<2x1x32xf32, #tpu.memory_space<vmem>>, vector<1x1x32xf32>
    %79 = vector.shape_cast %78 : vector<1x1x32xf32> to vector<1x32xf32>
    %cst_48 = arith.constant dense<0.000000e+00> : vector<32xf32>
    %80 = vector.multi_reduction <add>, %75, %cst_48 [0] : vector<8x32xf32> to vector<32xf32>
    %81 = vector.shape_cast %80 : vector<32xf32> to vector<1x32xf32>
    %82 = arith.mulf %75, %75 : vector<8x32xf32>
    %cst_49 = arith.constant dense<0.000000e+00> : vector<32xf32>
    %83 = vector.multi_reduction <add>, %82, %cst_49 [0] : vector<8x32xf32> to vector<32xf32>
    %84 = vector.shape_cast %83 : vector<32xf32> to vector<1x32xf32>
    %cst_50 = arith.constant 1.250000e-01 : f32
    %85 = vector.broadcast %cst_50 : f32 to vector<1x32xf32>
    %86 = arith.mulf %81, %85 : vector<1x32xf32>
    %cst_51 = arith.constant 1.250000e-01 : f32
    %87 = vector.broadcast %cst_51 : f32 to vector<1x32xf32>
    %88 = arith.mulf %84, %87 : vector<1x32xf32>
    %89 = arith.mulf %86, %86 : vector<1x32xf32>
    %90 = arith.subf %88, %89 : vector<1x32xf32>
    %cst_52 = arith.constant 0.000000e+00 : f32
    %91 = vector.broadcast %cst_52 : f32 to vector<1x32xf32>
    %92 = arith.maximumf %90, %91 : vector<1x32xf32>
    %cst_53 = arith.constant 9.99999974E-6 : f32
    %93 = vector.broadcast %cst_53 : f32 to vector<1x32xf32>
    %94 = arith.addf %92, %93 : vector<1x32xf32>
    %95 = math.rsqrt %94 : vector<1x32xf32>
    %96 = arith.mulf %77, %95 : vector<1x32xf32>
    %97 = arith.mulf %86, %96 : vector<1x32xf32>
    %98 = arith.subf %79, %97 : vector<1x32xf32>
    %99 = vector.broadcast %96 : vector<1x32xf32> to vector<8x32xf32>
    %100 = arith.mulf %75, %99 : vector<8x32xf32>
    %101 = vector.broadcast %98 : vector<1x32xf32> to vector<8x32xf32>
    %102 = arith.addf %100, %101 : vector<8x32xf32>
    %cst_54 = arith.constant 0.000000e+00 : f32
    %103 = vector.broadcast %cst_54 : f32 to vector<8x32xf32>
    %104 = arith.maximumf %102, %103 : vector<8x32xf32>
    %c0_55 = arith.constant 0 : index
    %c0_56 = arith.constant 0 : index
    %105 = vector.load %arg10[%c0_55, %c0_56] : memref<2x32xf32, #tpu.memory_space<vmem>>, vector<2x32xf32>
    %cst_57 = arith.constant dense<0.000000e+00> : vector<2x8xf32>
    %106 = tpu.matmul %105, %104, %cst_57 {dimension_numbers = #tpu.dot_dimension_numbers<[1], [1], [0], [0], [0, 0, 1, 0], [], []>} : vector<2x32xf32>, vector<8x32xf32>, vector<2x8xf32> -> vector<2x8xf32>
    %c0_58 = arith.constant 0 : index
    %c0_59 = arith.constant 0 : index
    %107 = vector.load %arg11[%c0_58, %c0_59] : memref<2x1xf32, #tpu.memory_space<vmem>>, vector<2x1xf32>
    %108 = vector.broadcast %107 : vector<2x1xf32> to vector<2x8xf32>
    %109 = arith.addf %106, %108 : vector<2x8xf32>
    %cst_60 = arith.constant 2.000000e+01 : f32
    %110 = vector.broadcast %cst_60 : f32 to vector<2x8xf32>
    %111 = arith.cmpf ogt, %109, %110 : vector<2x8xf32>
    %cst_61 = arith.constant 2.000000e+01 : f32
    %112 = vector.broadcast %cst_61 : f32 to vector<2x8xf32>
    %113 = arith.minimumf %109, %112 : vector<2x8xf32>
    %114 = math.exp %113 : vector<2x8xf32>
    %115 = math.log1p %114 : vector<2x8xf32>
    %116 = arith.select %111, %109, %115 : vector<2x8xi1>, vector<2x8xf32>
    %cst_62 = arith.constant 1.190000e-07 : f32
    %117 = vector.broadcast %cst_62 : f32 to vector<2x8xf32>
    %118 = arith.maximumf %116, %117 : vector<2x8xf32>
    %c0_63 = arith.constant 0 : index
    %c0_64 = arith.constant 0 : index
    %119 = vector.load %arg12[%c0_63, %c0_64] : memref<2x8xf32, #tpu.memory_space<vmem>>, vector<2x8xf32>
    tpu.vector_store %arg12[%c0_63, %c0_64], %118 {strides = array<i32>} : memref<2x8xf32, #tpu.memory_space<vmem>>, vector<2x8xf32>,
    %120 = vector.extract_strided_slice %118 {offsets = [0, 0], sizes = [1, 8], strides = [1, 1]} : vector<2x8xf32> to vector<1x8xf32>
    %121 = vector.extract_strided_slice %118 {offsets = [1, 0], sizes = [1, 8], strides = [1, 1]} : vector<2x8xf32> to vector<1x8xf32>
    %c0_65 = arith.constant 0 : index
    %c0_66 = arith.constant 0 : index
    %122 = vector.load %arg1[%c0_65, %c0_66] : memref<1x8xf32, #tpu.memory_space<vmem>>, vector<1x8xf32>
    %cst_67 = arith.constant 1.190000e-07 : f32
    %cst_68 = arith.constant 0.99999988 : f32
    %123 = vector.broadcast %cst_67 : f32 to vector<1x8xf32>
    %124 = arith.maximumf %123, %122 : vector<1x8xf32>
    %125 = vector.broadcast %cst_68 : f32 to vector<1x8xf32>
    %126 = arith.minimumf %125, %124 : vector<1x8xf32>
    %127 = arith.addf %120, %121 : vector<1x8xf32>
    %128 = tpu.concatenate %118, %127 in 0 : vector<2x8xf32>, vector<1x8xf32> -> vector<3x8xf32>
    %cst_69 = arith.constant 1.000000e+00 : f32
    %129 = vector.broadcast %cst_69 : f32 to vector<3x8xf32>
    %130 = arith.addf %128, %129 : vector<3x8xf32>
    %cst_70 = arith.constant 1.000000e+00 : f32
    %131 = vector.broadcast %cst_70 : f32 to vector<3x8xf32>
    %132 = arith.addf %130, %131 : vector<3x8xf32>
    %133 = tpu.reciprocal %132 {approx = true} : vector<3x8xf32> -> vector<3x8xf32>
    %cst_71 = arith.constant 676.520386 : f32
    %134 = vector.broadcast %cst_71 : f32 to vector<3x8xf32>
    %135 = arith.mulf %134, %133 : vector<3x8xf32>
    %cst_72 = arith.constant 2.000000e+00 : f32
    %136 = vector.broadcast %cst_72 : f32 to vector<3x8xf32>
    %137 = arith.addf %130, %136 : vector<3x8xf32>
    %138 = tpu.reciprocal %137 {approx = true} : vector<3x8xf32> -> vector<3x8xf32>
    %cst_73 = arith.constant -1259.13916 : f32
    %139 = vector.broadcast %cst_73 : f32 to vector<3x8xf32>
    %140 = arith.mulf %139, %138 : vector<3x8xf32>
    %cst_74 = arith.constant 3.000000e+00 : f32
    %141 = vector.broadcast %cst_74 : f32 to vector<3x8xf32>
    %142 = arith.addf %130, %141 : vector<3x8xf32>
    %143 = tpu.reciprocal %142 {approx = true} : vector<3x8xf32> -> vector<3x8xf32>
    %cst_75 = arith.constant 771.323425 : f32
    %144 = vector.broadcast %cst_75 : f32 to vector<3x8xf32>
    %145 = arith.mulf %144, %143 : vector<3x8xf32>
    %cst_76 = arith.constant 4.000000e+00 : f32
    %146 = vector.broadcast %cst_76 : f32 to vector<3x8xf32>
    %147 = arith.addf %130, %146 : vector<3x8xf32>
    %148 = tpu.reciprocal %147 {approx = true} : vector<3x8xf32> -> vector<3x8xf32>
    %cst_77 = arith.constant -176.615036 : f32
    %149 = vector.broadcast %cst_77 : f32 to vector<3x8xf32>
    %150 = arith.mulf %149, %148 : vector<3x8xf32>
    %cst_78 = arith.constant 5.000000e+00 : f32
    %151 = vector.broadcast %cst_78 : f32 to vector<3x8xf32>
    %152 = arith.addf %130, %151 : vector<3x8xf32>
    %153 = tpu.reciprocal %152 {approx = true} : vector<3x8xf32> -> vector<3x8xf32>
    %cst_79 = arith.constant 12.5073433 : f32
    %154 = vector.broadcast %cst_79 : f32 to vector<3x8xf32>
    %155 = arith.mulf %154, %153 : vector<3x8xf32>
    %cst_80 = arith.constant 6.000000e+00 : f32
    %156 = vector.broadcast %cst_80 : f32 to vector<3x8xf32>
    %157 = arith.addf %130, %156 : vector<3x8xf32>
    %158 = tpu.reciprocal %157 {approx = true} : vector<3x8xf32> -> vector<3x8xf32>
    %cst_81 = arith.constant -0.138571098 : f32
    %159 = vector.broadcast %cst_81 : f32 to vector<3x8xf32>
    %160 = arith.mulf %159, %158 : vector<3x8xf32>
    %cst_82 = arith.constant 7.000000e+00 : f32
    %161 = vector.broadcast %cst_82 : f32 to vector<3x8xf32>
    %162 = arith.addf %130, %161 : vector<3x8xf32>
    %163 = tpu.reciprocal %162 {approx = true} : vector<3x8xf32> -> vector<3x8xf32>
    %cst_83 = arith.constant 9.98436917E-6 : f32
    %164 = vector.broadcast %cst_83 : f32 to vector<3x8xf32>
    %165 = arith.mulf %164, %163 : vector<3x8xf32>
    %cst_84 = arith.constant 8.000000e+00 : f32
    %166 = vector.broadcast %cst_84 : f32 to vector<3x8xf32>
    %167 = arith.addf %130, %166 : vector<3x8xf32>
    %168 = tpu.reciprocal %167 {approx = true} : vector<3x8xf32> -> vector<3x8xf32>
    %cst_85 = arith.constant 1.50563267E-7 : f32
    %169 = vector.broadcast %cst_85 : f32 to vector<3x8xf32>
    %170 = arith.mulf %169, %168 : vector<3x8xf32>
    %171 = arith.addf %135, %140 : vector<3x8xf32>
    %172 = arith.addf %145, %150 : vector<3x8xf32>
    %173 = arith.addf %155, %160 : vector<3x8xf32>
    %174 = arith.addf %165, %170 : vector<3x8xf32>
    %175 = arith.addf %171, %172 : vector<3x8xf32>
    %176 = arith.addf %173, %174 : vector<3x8xf32>
    %177 = arith.addf %175, %176 : vector<3x8xf32>
    %cst_86 = arith.constant 1.000000e+00 : f32
    %178 = vector.broadcast %cst_86 : f32 to vector<3x8xf32>
    %179 = arith.addf %178, %177 : vector<3x8xf32>
    %cst_87 = arith.constant 7.000000e+00 : f32
    %180 = vector.broadcast %cst_87 : f32 to vector<3x8xf32>
    %181 = arith.addf %130, %180 : vector<3x8xf32>
    %cst_88 = arith.constant 5.000000e-01 : f32
    %182 = vector.broadcast %cst_88 : f32 to vector<3x8xf32>
    %183 = arith.addf %181, %182 : vector<3x8xf32>
    %cst_89 = arith.constant 6.28318548 : f32
    %184 = math.log %cst_89 : f32
    %cst_90 = arith.constant 5.000000e-01 : f32
    %185 = arith.mulf %cst_90, %184 : f32
    %cst_91 = arith.constant 5.000000e-01 : f32
    %186 = vector.broadcast %cst_91 : f32 to vector<3x8xf32>
    %187 = arith.addf %130, %186 : vector<3x8xf32>
    %188 = math.log %183 : vector<3x8xf32>
    %189 = arith.mulf %187, %188 : vector<3x8xf32>
    %190 = vector.broadcast %185 : f32 to vector<3x8xf32>
    %191 = arith.addf %190, %189 : vector<3x8xf32>
    %192 = arith.subf %191, %183 : vector<3x8xf32>
    %193 = math.log %179 : vector<3x8xf32>
    %194 = arith.addf %192, %193 : vector<3x8xf32>
    %cst_92 = arith.constant 1.000000e+00 : f32
    %195 = vector.broadcast %cst_92 : f32 to vector<3x8xf32>
    %196 = arith.addf %128, %195 : vector<3x8xf32>
    %197 = arith.mulf %128, %196 : vector<3x8xf32>
    %198 = math.log %197 : vector<3x8xf32>
    %199 = arith.subf %194, %198 : vector<3x8xf32>
    %cst_93 = arith.constant 1.000000e+00 : f32
    %200 = vector.broadcast %cst_93 : f32 to vector<1x8xf32>
    %201 = arith.subf %120, %200 : vector<1x8xf32>
    %202 = math.log %126 : vector<1x8xf32>
    %203 = arith.mulf %201, %202 : vector<1x8xf32>
    %cst_94 = arith.constant 1.000000e+00 : f32
    %204 = vector.broadcast %cst_94 : f32 to vector<1x8xf32>
    %205 = arith.subf %121, %204 : vector<1x8xf32>
    %cst_95 = arith.constant 0.000000e+00 : f32
    %206 = vector.broadcast %cst_95 : f32 to vector<1x8xf32>
    %207 = arith.subf %206, %126 : vector<1x8xf32>
    %208 = math.log1p %207 : vector<1x8xf32>
    %209 = arith.mulf %205, %208 : vector<1x8xf32>
    %210 = arith.addf %203, %209 : vector<1x8xf32>
    %211 = vector.extract_strided_slice %199 {offsets = [2, 0], sizes = [1, 8], strides = [1, 1]} : vector<3x8xf32> to vector<1x8xf32>
    %212 = arith.addf %210, %211 : vector<1x8xf32>
    %213 = vector.extract_strided_slice %199 {offsets = [0, 0], sizes = [1, 8], strides = [1, 1]} : vector<3x8xf32> to vector<1x8xf32>
    %214 = arith.subf %212, %213 : vector<1x8xf32>
    %215 = vector.extract_strided_slice %199 {offsets = [1, 0], sizes = [1, 8], strides = [1, 1]} : vector<3x8xf32> to vector<1x8xf32>
    %216 = arith.subf %214, %215 : vector<1x8xf32>
    %217 = vector.shape_cast %216 : vector<1x8xf32> to vector<1x1x8xf32>
    %cst_96 = arith.constant dense<0.000000e+00> : vector<1xf32>
    %218 = vector.multi_reduction <add>, %217, %cst_96 [1, 2] : vector<1x1x8xf32> to vector<1xf32>
    %219 = vector.shape_cast %218 : vector<1xf32> to vector<1x1x1xf32>
    %220 = vector.extract %219[0, 0, 0] : f32 from vector<1x1x1xf32>
    %221 = vector.broadcast %220 : f32 to vector<1x1xf32>
    %cst_97 = arith.constant 8.000000e+00 : f32
    %222 = vector.broadcast %cst_97 : f32 to vector<1x1xf32>
    %223 = arith.divf %221, %222 : vector<1x1xf32>
    %cst_98 = arith.constant 0.000000e+00 : f32
    %224 = vector.broadcast %cst_98 : f32 to vector<1x1xf32>
    %225 = arith.subf %224, %223 : vector<1x1xf32>
    %c0_99 = arith.constant 0 : index
    %c0_100 = arith.constant 0 : index
    %226 = vector.load %arg13[%c0_99, %c0_100] : memref<1x1xf32, #tpu.memory_space<vmem>>, vector<1x1xf32>
    tpu.vector_store %arg13[%c0_99, %c0_100], %225 {strides = array<i32>} : memref<1x1xf32, #tpu.memory_space<vmem>>, vector<1x1xf32>,
    return
  }
}

</mosaic_0001>

<bundles_post_ra>
// kernel: tpu_custom_call.1
= control target key start
LH: loop header
LB: loop body
LE: loop exit
PB: predicated region body
PF: predicated region fallthrough
CT: control target
= control target key end

     0   :  { %19 = vsyncpa [#allocation3], 0  ;;  %s1182_s0 = inlined_call_operand.hbm [shape: f32[8,10], index: 0, kind: input, shape index: {}]   ;;  %s1183_s1 = inlined_call_operand.vmem [shape: f32[1,8], index: 1, kind: input, shape index: {}]   ;;  %s1184_s2 = inlined_call_operand.hbm [shape: f32[10,32], index: 2, kind: input, shape index: {}]   ;;  %s1185_s3 = inlined_call_operand.vmem [shape: f32[1,32], index: 3, kind: input, shape index: {}]   ;;  %s1186_s4 = inlined_call_operand.vmem [shape: f32[1,32], index: 4, kind: input, shape index: {}]   ;;  %s1187_s5 = inlined_call_operand.vmem [shape: f32[1,32], index: 5, kind: input, shape index: {}]   ;;  %s1188_s6 = inlined_call_operand.hbm [shape: f32[2,32,32], index: 6, kind: input, shape index: {}]   ;;  %s1189_s7 = inlined_call_operand.vmem [shape: f32[2,1,32], index: 7, kind: input, shape index: {}]   ;;  %s1190_s8 = inlined_call_operand.vmem [shape: f32[2,1,32], index: 8, kind: input, shape index: {}]   ;;  %s1191_s9 = inlined_call_operand.vmem [shape: f32[2,1,32], index: 9, kind: input, shape index: {}]   ;;  %s1192_s10 = inlined_call_operand.vmem [shape: f32[2,32], index: 10, kind: input, shape index: {}]   ;;  %s1193_s11 = inlined_call_operand.vmem [shape: f32[2,1], index: 11, kind: input, shape index: {}]   ;;  %s1194_s12 = inlined_call_operand.hbm [shape: f32[2,8], index: 12, kind: output, shape index: {0}]   ;;  %s1195_s13 = inlined_call_operand.hbm [shape: f32[1,1], index: 13, kind: output, shape index: {1}]  }
   0x1   :  { %20 = vsyncpa [#allocation6], 0 }
   0x2   :  { %21 = vsyncpa [#allocation4], 0 }
   0x3   :  { %22 = vsyncpa [#allocation10], 0  ;;  %s956_s25 = smov [#allocation5]   ;;  %s838_s29 = scalar_lea.hbm %s1184_s2, 256 }
   0x4   :  { %s40_s26 = sshll.u32 %s956_s25, 4  ;;  %p839_p0 = scmp.ne.s32.totalorder %s1184_s2, %s838_s29  ;;  %s41_s26 = int_to_ptr.vmem [resolvable:$true] %s40_s26 }
   0x5   :  { %p842_p1 = scmp.lt.u32.totalorder %s838_s29, %s1184_s2 }
   0x7   :  { %p844_p2 = pnand %p842_p1, %p839_p0 }
   0x9   :  { %847 = shalt.err (!%p844_p2)
}
   0xa   :  { %s848_s17 = scalar_lea.vmem %s41_s26, 256  ;;  %p853_p4 = scmp.lt.s32.totalorder %s41_s26, %s41_s26 }
   0xb   :  { %p849_p3 = scmp.ne.s32.totalorder %s41_s26, %s848_s17  ;;  %p854_p5 = scmp.lt.s32.totalorder %s848_s17, %s848_s17 }
   0xd   :  { %p855_p6 = por %p854_p5, %p853_p4 }
   0xf   :  { %p856_p7 = pnand %p855_p6, %p849_p3 }
  0x11   :  { %859 = shalt.err (!%p856_p7)
}
  0x12   :  { %s957_s18 = smov 128   ;;  %s958_s19 = smov 8  }
  0x13   :  { %46 = dma.hbm_to_vmem [thread:$0]  %s1184_s2, 256, %s41_s26, [#allocation6], %s957_s18, %s957_s18, %s958_s19  }
  0x14   :  { %s959_s22 = smov [#allocation2]   ;;  %s960_s24 = smov [#allocation7]  }
  0x15   :  { %s29_s23 = sshll.u32 %s959_s22, 4  ;;  %s58_s25 = sshll.u32 %s960_s24, 4  ;;  %s30_s23 = int_to_ptr.vmem [resolvable:$true] %s29_s23  ;;  %s59_s25 = int_to_ptr.vmem [resolvable:$true] %s58_s25 }
  0x16   :  { %s860_s29 = scalar_lea.hbm %s1182_s0, 128 }
  0x17   :  { %p861_p8 = scmp.ne.s32.totalorder %s1182_s0, %s860_s29  ;;  %p864_p9 = scmp.lt.u32.totalorder %s860_s29, %s1182_s0 }
  0x19   :  { %p866_p10 = pnand %p864_p9, %p861_p8 }
  0x1b   :  { %869 = shalt.err (!%p866_p10)
}
  0x1c   :  { %s870_s2 = scalar_lea.vmem %s30_s23, 128  ;;  %p875_p12 = scmp.lt.s32.totalorder %s30_s23, %s30_s23 }
  0x1d   :  { %p871_p11 = scmp.ne.s32.totalorder %s30_s23, %s870_s2  ;;  %p876_p13 = scmp.lt.s32.totalorder %s870_s2, %s870_s2 }
  0x1f   :  { %p877_p0 = por %p876_p13, %p875_p12 }
  0x21   :  { %p878_p1 = pnand %p877_p0, %p871_p11 }
  0x23   :  { %881 = shalt.err (!%p878_p1)
}
  0x24   :  { %32 = dma.hbm_to_vmem [thread:$0]  %s1182_s0, 128, %s30_s23, [#allocation3]  }
  0x25   :  { %s882_s22 = scalar_lea.hbm %s1188_s6, 1024 }
  0x26   :  { %p883_p2 = scmp.ne.s32.totalorder %s1188_s6, %s882_s22  ;;  %p886_p3 = scmp.lt.u32.totalorder %s882_s22, %s1188_s6 }
  0x28   :  { %p888_p4 = pnand %p886_p3, %p883_p2 }
  0x2a   :  { %891 = shalt.err (!%p888_p4)
}
  0x2b   :  { %s892_s30 = scalar_lea.vmem %s59_s25, 1024  ;;  %p897_p6 = scmp.lt.s32.totalorder %s59_s25, %s59_s25 }
  0x2c   :  { %p893_p5 = scmp.ne.s32.totalorder %s59_s25, %s892_s30  ;;  %p898_p7 = scmp.lt.s32.totalorder %s892_s30, %s892_s30 }
  0x2e   :  { %p899_p8 = por %p898_p7, %p897_p6 }
  0x30   :  { %p900_p9 = pnand %p899_p8, %p893_p5 }
  0x32   :  { %903 = shalt.err (!%p900_p9)
}
  0x33   :  { %64 = dma.hbm_to_vmem [thread:$0]  %s1188_s6, 1024, %s59_s25, [#allocation6], %s957_s18, %s957_s18, %s958_s19  }
  0x34   :  { %948 = dma.done.wait [#allocation3], 128  }
  0x35   :  { %949 = vsyncadd [#allocation3], 4294967168 }
  0x36   :  { %950 = dma.done.wait [#allocation6], 1280  }
  0x37   :  { %951 = vsyncadd [#allocation6], 4294966016  ;;  %v961_v0 = vmov 0.0|0.0   ;;  %vm962_vm0 = vmmov 0   ;;  %v963_v1 = vmov 0.0   ;;  %vm98_vm1 = vcmask 1041408  }
  0x38   :  { %771 = vmatprep.subr.bf16.mxu0 %v961_v0  ;;  %775 = vmatprep.subr.bf16.mxu1 %v961_v0  ;;  %v85_v2 = vld [vmem:[#allocation5] sm:$0xff]  ;;  %v86_v3 = vld [vmem:[#allocation5 + $0x8] sm:$0x3]  ;;  %vm964_vm2 = vmmov 1   ;;  %v84_v5 = vld [vmem:[#allocation2] sm:$0xff]  ;;  %vm94_vm4 = vcmask 80896   ;;  %v201_v37 = vlaneseq }
  0x39   :  { %741 = vmatprep.mubr.msk.f32.mxu0 %vm962_vm0, %v963_v1  ;;  %752 = vmatprep.mubr.msk.f32.mxu1 %vm962_vm0, %v963_v1  ;;  %vm773_vm3 = vmpackc.low %vm98_vm1, %vm964_vm2  ;;  %v772_v4 = vpack.c.bf16 %v86_v3, %v85_v2  ;;  %v215_v6 = vld [vmem:[#allocation7] sm:$0xff]  ;;  %v216_v7 = vld [vmem:[#allocation7 + $0x8] sm:$0xff]  ;;  %vm174_vm5 = vcmask 261120   ;;  %vm569_vm8 = vcmask 58368   ;;  %vm662_vm10 = vcmask 57344  }
  0x3a   :  { %v776_v8 = vpack.c.bf16 %v216_v7, %v215_v6  ;;  %v217_v9 = vld [vmem:[#allocation7 + $0x10] sm:$0xff]  ;;  %v218_v10 = vld [vmem:[#allocation7 + $0x18] sm:$0xff]  ;;  %v709_v12 = vld [vmem:[%s1185_s3] ss:$0 sm:$0xff]  ;;  %v202_v38 = vshrl.u32 %v201_v37, 7 }
  0x3b   :  { %774 = vmatpush3.bf16.msk.msra.mxu0 %vm773_vm3, %v772_v4  ;;  %v779_v11 = vpack.c.bf16 %v218_v10, %v217_v9  ;;  %v172_v39 = vld [vmem:[%s1186_s4] sm:$0x1]  ;;  %v342_v51 = vld [vmem:[#allocation7 + $0x20] sm:$0xff]  ;;  %v344_v54 = vld [vmem:[#allocation7 + $0x30] sm:$0xff] }
  0x3c   :  { %781 = vmatprep.subr.bf16.mxu0 %v961_v0  ;;  %777 = vmatpush3.bf16.msra.mxu1 %v776_v8  ;;  %v1100_v40 = vsub.s32 0, %v202_v38  ;;  %v173_v43 = vld [vmem:[%s1187_s5] sm:$0x1]  ;;  %v345_v55 = vld [vmem:[#allocation7 + $0x38] sm:$0xff] }
  0x3d   :  { %778 = vmatprep.subr.bf16.mxu1 %v961_v0  ;;  %v343_v52 = vld [vmem:[#allocation7 + $0x28] sm:$0xff]  ;;  %v785_v56 = vpack.c.bf16 %v345_v55, %v344_v54 }
  0x3e   :  { %742 = vmatmul.mubr.msk.f32.vlgmr.msra.gmra.mrb[0].mxu0 %vm94_vm4, %v84_v5  ;;  %v782_v53 = vpack.c.bf16 %v343_v52, %v342_v51  ;;  %v712_v57 = vld [vmem:[%s1189_s7] ss:$0 sm:$0xff] }
  0x3f   :  { %763 = vmatprep.mubr.msk.f32.mxu0 %vm962_vm0, %v963_v1 }
  0x40   :  { %780 = vmatpush3.bf16.msra.mxu1 %v779_v11  ;;  %783 = vmatpush3.bf16.msra.mxu0 %v782_v53 }
  0x41   :  { %766 = vmatprep.subr.mxu1 %v963_v1  ;;  %784 = vmatprep.subr.bf16.mxu0 %v961_v0 }
  0x44   :  { %786 = vmatpush3.bf16.msra.mxu0 %v785_v56 }
 0x111   :  { %v168_v13 = vpop.f32.mrb[0].mxu0 }
 0x112   :  { %v169_v14 = vadd.f32 %v709_v12, %v168_v13  ;;  %v743_v15 = vpop.f32.mrb[1].mxu0 }
 0x114   :  { %v175_v16 = vsel %vm174_vm5, %v169_v14, 0.0  ;;  %v182_v17 = vmul.f32 %v169_v14, %v169_v14 }
 0x115   :  { %v176_v18 = vrot.slane %v175_v16, 4 }
 0x116   :  { %v183_v19 = vsel %vm174_vm5, %v182_v17, 0.0 }
 0x117   :  { %v177_v20 = vadd.f32 %v176_v18, %v175_v16  ;;  %v184_v21 = vrot.slane %v183_v19, 4  ;;  %v299_v18 = vld [vmem:[%s1190_s8] sm:$0x1] }
 0x119   :  { %v178_v22 = vrot.slane %v177_v20, 2  ;;  %v185_v23 = vadd.f32 %v184_v21, %v183_v19  ;;  %v300_v21 = vld [vmem:[%s1191_s9] sm:$0x1] }
 0x11b   :  { %v179_v24 = vadd.f32 %v178_v22, %v177_v20  ;;  %v186_v25 = vrot.slane %v185_v23, 2 }
 0x11d   :  { %v180_v26 = vrot.slane %v179_v24, 1  ;;  %v187_v27 = vadd.f32 %v186_v25, %v185_v23 }
 0x11f   :  { %v181_v28 = vadd.f32 %v180_v26, %v179_v24  ;;  %v188_v29 = vrot.slane %v187_v27, 1 }
 0x121   :  { %v189_v30 = vadd.f32 %v188_v29, %v187_v27  ;;  %v190_v31 = vmul.f32 0.125, %v181_v28  ;;  %v472_v29 = vld [vmem:[%s1193_s11] sm:$0x3] }
 0x123   :  { %v191_v32 = vmul.f32 0.125, %v189_v30  ;;  %v192_v33 = vmul.f32 %v190_v31, %v190_v31  ;;  %v965_v30 = vmov 0  }
 0x124   :  { %801 = vset.pattern.permute.xlu0 %v965_v30 }
 0x125   :  { %v193_v34 = vsub.f32 %v191_v32, %v192_v33  ;;  %475 = vperm.xlu0 %801, %v472_v29  }
 0x127   :  { %v194_v35 = vmax.f32 %v193_v34, 0.0 }
 0x129   :  { %v195_v36 = vadd.f32 1e-05, %v194_v35 }
 0x12b   :  { %802 = vrsqrt.f32 %v195_v36 }
 0x135   :  { %v803_v41 = vpop.eup %802 }
 0x136   :  { %v197_v42 = vmul.f32 %v803_v41, %v172_v39 }
 0x138   :  { %v198_v44 = vmul.f32 %v197_v42, %v190_v31  ;;  %v204_v45 = vrot.slane %v197_v42, %v1100_v40  ;;  %v715_v31 = vld [vmem:[%s1189_s7 + $0x1] ss:$0 sm:$0xff] }
 0x13a   :  { %v199_v46 = vsub.f32 %v173_v43, %v198_v44  ;;  %v206_v47 = vmul.f32 %v204_v45, %v169_v14 }
 0x13c   :  { %v211_v48 = vrot.slane %v199_v46, %v1100_v40 }
 0x13e   :  { %v213_v49 = vadd.f32 %v211_v48, %v206_v47 }
 0x140   :  { %v214_v50 = vmax.f32 %v213_v49, 0.0 }
 0x142   :  { %753 = vmatmul.mubr.msk.f32.vlgmr.msra.gmra.mrb[0].mxu1 %vm174_vm5, %v214_v50 }
 0x143   :  { %768 = vmatprep.mubr.msk.f32.mxu1 %vm962_vm0, %v963_v1 }
 0x215   :  { %v295_v58 = vpop.f32.mrb[0].mxu1 }
 0x216   :  { %v296_v59 = vadd.f32 %v712_v57, %v295_v58  ;;  %v754_v60 = vpop.f32.mrb[1].mxu1  ;;  %v717_v57 = vld [vmem:[%s1190_s8 + $0x1] sm:$0x1] }
 0x217   :  { %v718_v60 = vld [vmem:[%s1191_s9 + $0x1] sm:$0x1] }
 0x218   :  { %v301_v61 = vsel %vm174_vm5, %v296_v59, 0.0  ;;  %v308_v62 = vmul.f32 %v296_v59, %v296_v59 }
 0x219   :  { %v302_v63 = vrot.slane %v301_v61, 4 }
 0x21a   :  { %v309_v1 = vsel %vm174_vm5, %v308_v62, 0.0 }
 0x21b   :  { %v303_v2 = vadd.f32 %v302_v63, %v301_v61  ;;  %v310_v3 = vrot.slane %v309_v1, 4 }
 0x21d   :  { %v304_v0 = vrot.slane %v303_v2, 2  ;;  %v311_v4 = vadd.f32 %v310_v3, %v309_v1 }
 0x21f   :  { %v305_v5 = vadd.f32 %v304_v0, %v303_v2  ;;  %v312_v6 = vrot.slane %v311_v4, 2 }
 0x221   :  { %v306_v7 = vrot.slane %v305_v5, 1  ;;  %v313_v8 = vadd.f32 %v312_v6, %v311_v4  ;;  %v471_v4 = vld [vmem:[%s1192_s10] sm:$0x3] }
 0x223   :  { %v307_v9 = vadd.f32 %v306_v7, %v305_v5  ;;  %v314_v10 = vrot.slane %v313_v8, 1  ;;  %v476_v5 = vpop.permute.xlu0 %475 }
 0x225   :  { %v315_v11 = vadd.f32 %v314_v10, %v313_v8  ;;  %v316_v12 = vmul.f32 0.125, %v307_v9 }
 0x227   :  { %v317_v13 = vmul.f32 0.125, %v315_v11  ;;  %v318_v14 = vmul.f32 %v316_v12, %v316_v12 }
 0x229   :  { %v319_v15 = vsub.f32 %v317_v13, %v318_v14 }
 0x22b   :  { %v320_v16 = vmax.f32 %v319_v15, 0.0 }
 0x22d   :  { %v321_v17 = vadd.f32 1e-05, %v320_v16 }
 0x22f   :  { %804 = vrsqrt.f32 %v321_v17 }
 0x239   :  { %v805_v19 = vpop.eup %804 }
 0x23a   :  { %v323_v20 = vmul.f32 %v805_v19, %v299_v18 }
 0x23c   :  { %v324_v22 = vmul.f32 %v323_v20, %v316_v12  ;;  %v330_v23 = vrot.slane %v323_v20, %v1100_v40 }
 0x23e   :  { %v325_v24 = vsub.f32 %v300_v21, %v324_v22  ;;  %v332_v25 = vmul.f32 %v330_v23, %v296_v59 }
 0x240   :  { %v337_v26 = vrot.slane %v325_v24, %v1100_v40 }
 0x242   :  { %v339_v27 = vadd.f32 %v337_v26, %v332_v25  ;;  %v571_v25 = vld [vmem:[%s1183_s1] sm:$0x1]  ;;  %s966_s1 = smov [#allocation8]  }
 0x243   :  { %s685_s10 = sshll.u32 %s966_s1, 4  ;;  %s686_s10 = int_to_ptr.vmem [resolvable:$true] %s685_s10 }
 0x244   :  { %v340_v28 = vmax.f32 %v339_v27, 0.0  ;;  %s904_s30 = scalar_lea.vmem %s686_s10, 32  ;;  %p909_p11 = scmp.lt.s32.totalorder %s686_s10, %s686_s10 }
 0x245   :  { %p905_p10 = scmp.ne.s32.totalorder %s686_s10, %s904_s30  ;;  %p910_p12 = scmp.lt.s32.totalorder %s904_s30, %s904_s30 }
 0x246   :  { %764 = vmatmul.mubr.msk.f32.vlgmr.msra.gmra.mrb[2].mxu0 %vm174_vm5, %v340_v28  ;;  %v572_v28 = vmax.f32 %v571_v25, 1.19e-07 }
 0x247   :  { %p911_p13 = por %p910_p12, %p909_p11 }
 0x249   :  { %p912_p0 = pnand %p911_p13, %p905_p10 }
 0x319   :  { %v423_v32 = vpop.f32.mrb[2].mxu0 }
 0x31a   :  { %v424_v33 = vadd.f32 %v715_v31, %v423_v32  ;;  %v765_v34 = vpop.f32.mrb[3].mxu0 }
 0x31b   :  { %v573_v34 = vmin.f32 %v572_v28, 0.9999999 }
 0x31c   :  { %v431_v35 = vsel %vm174_vm5, %v424_v33, 0.0  ;;  %v438_v36 = vmul.f32 %v424_v33, %v424_v33 }
 0x31d   :  { %v432_v37 = vrot.slane %v431_v35, 4 }
 0x31e   :  { %v439_v38 = vsel %vm174_vm5, %v438_v36, 0.0 }
 0x31f   :  { %v433_v39 = vadd.f32 %v432_v37, %v431_v35  ;;  %v440_v41 = vrot.slane %v439_v38, 4 }
 0x321   :  { %v434_v42 = vrot.slane %v433_v39, 2  ;;  %v441_v43 = vadd.f32 %v440_v41, %v439_v38  ;;  %v633_v38 = vsub.f32 0.0, %v573_v34 }
 0x323   :  { %v435_v44 = vadd.f32 %v434_v42, %v433_v39  ;;  %v442_v45 = vrot.slane %v441_v43, 2  ;;  %v634_v39 = vadd.f32 1.0, %v633_v38 }
 0x325   :  { %v436_v46 = vrot.slane %v435_v44, 1  ;;  %v443_v47 = vadd.f32 %v442_v45, %v441_v43 }
 0x327   :  { %v437_v48 = vadd.f32 %v436_v46, %v435_v44  ;;  %v444_v49 = vrot.slane %v443_v47, 1 }
 0x329   :  { %v445_v50 = vadd.f32 %v444_v49, %v443_v47  ;;  %v446_v51 = vmul.f32 0.125, %v437_v48 }
 0x32b   :  { %v447_v52 = vmul.f32 0.125, %v445_v50  ;;  %v448_v53 = vmul.f32 %v446_v51, %v446_v51 }
 0x32d   :  { %v449_v54 = vsub.f32 %v447_v52, %v448_v53 }
 0x32f   :  { %v450_v55 = vmax.f32 %v449_v54, 0.0 }
 0x331   :  { %v451_v56 = vadd.f32 1e-05, %v450_v55 }
 0x333   :  { %806 = vrsqrt.f32 %v451_v56 }
 0x33d   :  { %v807_v58 = vpop.eup %806 }
 0x33e   :  { %v453_v59 = vmul.f32 %v807_v58, %v717_v57 }
 0x340   :  { %v454_v61 = vmul.f32 %v453_v59, %v446_v51  ;;  %v460_v62 = vrot.slane %v453_v59, %v1100_v40 }
 0x342   :  { %v455_v63 = vsub.f32 %v718_v60, %v454_v61  ;;  %v462_v1 = vmul.f32 %v460_v62, %v424_v33  ;;  %v637_v61 = vmul.f32 -0.5, %v633_v38 }
 0x344   :  { %v467_v2 = vrot.slane %v455_v63, %v1100_v40 }
 0x346   :  { %v469_v3 = vadd.f32 %v467_v2, %v462_v1  ;;  %v638_v2 = vadd.f32 1.0, %v637_v61 }
 0x348   :  { %v470_v0 = vmax.f32 %v469_v3, 0.0 }
 0x34a   :  { %767 = vmatpush3.xpose.msk.msra.mxu1 %vm174_vm5, %v470_v0 }
 0x34d   :  { %769 = vmatmul.mubr.msk.f32.vlgmr.msra.gmra.mrb[2].mxu1 %vm174_vm5, %v471_v4  ;;  %v640_v4 = vand.u32 2147483647, %v633_v38 }
 0x34f   :  { %vm641_vm9 = vcmp.lt.f32.partialorder %v640_v4, 0.0004427343 }
 0x420   :  { %v550_v6 = vpop.f32.mrb[2].mxu1 }
 0x421   :  { %v551_v7 = vadd.f32 %v550_v6, %v476_v5  ;;  %v770_v8 = vpop.f32.mrb[3].mxu1 }
 0x423   :  { %v555_v9 = vmin.f32 %v551_v7, 20.0  ;;  %vm554_vm7 = vcmp.gt.f32.partialorder %v551_v7, 20.0 }
 0x425   :  { %v556_v10 = vmul.f32 1.442695, %v555_v9  ;;  %v639_v9 = vmul.f32 %v638_v2, %v633_v38 }
 0x427   :  { %808 = vpow2.f32 %v556_v10 }
 0x431   :  { %v809_v11 = vpop.eup %808 }
 0x432   :  { %v558_v12 = vadd.f32 1.0, %v809_v11  ;;  %v561_v13 = vmul.f32 -0.5, %v809_v11  ;;  %v564_v15 = vand.u32 2147483647, %v809_v11 }
 0x434   :  { %810 = vlog2.f32 %v558_v12  ;;  %v562_v14 = vadd.f32 1.0, %v561_v13  ;;  %vm565_vm6 = vcmp.lt.f32.partialorder %v564_v15, 0.0004427343 }
 0x436   :  { %v563_v18 = vmul.f32 %v809_v11, %v562_v14 }
 0x43e   :  { %v811_v16 = vpop.eup %810 }
 0x43f   :  { %v560_v17 = vmul.f32 0.6931472, %v811_v16 }
 0x441   :  { %v566_v19 = vsel %vm565_vm6, %v563_v18, %v560_v17 }
 0x442   :  { %v567_v20 = vsel %vm554_vm7, %v551_v7, %v566_v19 }
 0x443   :  { %v1146_v21 = vmax.f32 %v567_v20, 1.19e-07 }
 0x445   :  { %v575_v22 = vrot.slane %v1146_v21, 1  ;;  %570 = vst.msk [vmem:[#allocation8] sm:$0x3] %vm569_vm8, %v1146_v21  ;;  %v721_v14 = vadd.f32 -1.0, %v1146_v21 }
 0x447   :  { %v577_v23 = vadd.f32 %v575_v22, %v1146_v21 }
 0x449   :  { %v579_v24 = vrot.slane %v577_v23, 6 }
 0x44b   :  { %v581_v26 = vsel %vm98_vm1, %v1146_v21, %v579_v24 }
 0x44c   :  { %v582_v27 = vadd.f32 1.0, %v581_v26 }
 0x44e   :  { %v583_v29 = vadd.f32 1.0, %v582_v27  ;;  %v586_v30 = vadd.f32 2.0, %v582_v27  ;;  %v589_v31 = vadd.f32 3.0, %v582_v27  ;;  %v592_v32 = vadd.f32 4.0, %v582_v27 }
 0x44f   :  { %v595_v33 = vadd.f32 5.0, %v582_v27  ;;  %v598_v35 = vadd.f32 6.0, %v582_v27  ;;  %v601_v36 = vadd.f32 7.0, %v582_v27  ;;  %v604_v37 = vadd.f32 8.0, %v582_v27 }
 0x450   :  { %812 = vrcp.f32 %v583_v29  ;;  %v625_v0 = vmul.f32 %v582_v27, %v581_v26  ;;  %v616_v11 = vadd.f32 0.5, %v582_v27 }
 0x451   :  { %814 = vrcp.f32 %v586_v30  ;;  %v615_v42 = vadd.f32 0.5, %v601_v36 }
 0x452   :  { %816 = vrcp.f32 %v589_v31 }
 0x453   :  { %818 = vrcp.f32 %v592_v32 }
 0x454   :  { %820 = vrcp.f32 %v595_v33 }
 0x455   :  { %822 = vrcp.f32 %v598_v35 }
 0x456   :  { %824 = vrcp.f32 %v601_v36 }
 0x457   :  { %826 = vrcp.f32 %v604_v37 }
 0x458   :  { %828 = vlog2.f32 %v634_v39 }
 0x459   :  { %830 = vlog2.f32 %v615_v42 }
 0x45a   :  { %v813_v41 = vpop.eup %812  ;;  %832 = vlog2.f32 %v573_v34 }
 0x45b   :  { %v815_v43 = vpop.eup %814  ;;  %v585_v45 = vmul.f32 676.5204, %v813_v41  ;;  %834 = vlog2.f32 %v625_v0 }
 0x45c   :  { %v817_v44 = vpop.eup %816  ;;  %v588_v46 = vmul.f32 -1259.1392, %v815_v43 }
 0x45d   :  { %v819_v47 = vpop.eup %818  ;;  %v591_v48 = vmul.f32 771.3234, %v817_v44 }
 0x45e   :  { %v821_v49 = vpop.eup %820  ;;  %v594_v50 = vmul.f32 -176.61504, %v819_v47  ;;  %v607_v55 = vadd.f32 %v588_v46, %v585_v45 }
 0x45f   :  { %v823_v51 = vpop.eup %822  ;;  %v597_v52 = vmul.f32 12.507343, %v821_v49 }
 0x460   :  { %v825_v53 = vpop.eup %824  ;;  %v600_v54 = vmul.f32 -0.1385711, %v823_v51  ;;  %v608_v56 = vadd.f32 %v594_v50, %v591_v48 }
 0x461   :  { %v827_v57 = vpop.eup %826  ;;  %v603_v58 = vmul.f32 9.984369e-06, %v825_v53 }
 0x462   :  { %v606_v59 = vmul.f32 1.5056327e-07, %v827_v57  ;;  %v609_v60 = vadd.f32 %v600_v54, %v597_v52  ;;  %v611_v63 = vadd.f32 %v608_v56, %v607_v55  ;;  %v829_v3 = vpop.eup %828 }
 0x463   :  { %v831_v5 = vpop.eup %830  ;;  %v636_v8 = vmul.f32 0.6931472, %v829_v3 }
 0x464   :  { %v610_v62 = vadd.f32 %v606_v59, %v603_v58  ;;  %v618_v10 = vmul.f32 0.6931472, %v831_v5  ;;  %v833_v17 = vpop.eup %832 }
 0x465   :  { %v642_v12 = vsel %vm641_vm9, %v639_v9, %v636_v8  ;;  %v835_v18 = vpop.eup %834  ;;  %v631_v24 = vmul.f32 0.6931472, %v833_v17 }
 0x466   :  { %v612_v1 = vadd.f32 %v610_v62, %v609_v60  ;;  %v619_v13 = vmul.f32 %v618_v10, %v616_v11  ;;  %v647_v15 = vrot.slane %v642_v12, %v1100_v40  ;;  %v627_v26 = vmul.f32 0.6931472, %v835_v18 }
 0x467   :  { %v632_v30 = vmul.f32 %v721_v14, %v631_v24 }
 0x468   :  { %v613_v6 = vadd.f32 %v612_v1, %v611_v63  ;;  %v620_v16 = vadd.f32 0.9189385, %v619_v13  ;;  %v649_v19 = vmul.f32 %v721_v14, %v647_v15 }
 0x46a   :  { %v614_v7 = vadd.f32 1.0, %v613_v6  ;;  %v621_v22 = vsub.f32 %v620_v16, %v615_v42  ;;  %v651_v28 = vrot.slane %v649_v19, 1 }
 0x46c   :  { %836 = vlog2.f32 %v614_v7  ;;  %v653_v27 = vadd.f32 %v651_v28, %v632_v30 }
 0x476   :  { %v837_v20 = vpop.eup %836 }
 0x477   :  { %v623_v23 = vmul.f32 0.6931472, %v837_v20 }
 0x479   :  { %v624_v25 = vadd.f32 %v623_v23, %v621_v22 }
 0x47b   :  { %v628_v29 = vsub.f32 %v624_v25, %v627_v26 }
 0x47d   :  { %v655_v31 = vrot.slane %v628_v29, 2  ;;  %v659_v21 = vrot.slane %v628_v29, 1 }
 0x47f   :  { %v657_v32 = vadd.f32 %v655_v31, %v653_v27 }
 0x481   :  { %v658_v33 = vsub.f32 %v657_v32, %v628_v29 }
 0x483   :  { %v661_v40 = vsub.f32 %v658_v33, %v659_v21 }
 0x485   :  { %v663_v34 = vsel %vm662_vm10, %v661_v40, 0.0 }
 0x486   :  { %664 = vadd.xlane.f32.xlu0 %v663_v34 }
 0x487   :  { %915 = shalt.err (!%p912_p0)
}
 0x488   :  { %s916_s6 = scalar_lea.hbm %s1194_s12, 32 }
 0x489   :  { %p917_p1 = scmp.ne.s32.totalorder %s1194_s12, %s916_s6  ;;  %p920_p2 = scmp.lt.u32.totalorder %s916_s6, %s1194_s12 }
 0x48b   :  { %p922_p3 = pnand %p920_p2, %p917_p1 }
 0x48d   :  { %925 = shalt.err (!%p922_p3)
}
 0x48e   :  { %688 = dma.vmem_to_hbm [thread:$0]  %s686_s10, 32, %s1194_s12, [#allocation4]   ;;  %vm677_vm11 = vcmask 0  }
 0x48f   :  { %s967_s15 = smov [#allocation9]  }
 0x490   :  { %s695_s16 = sshll.u32 %s967_s15, 4  ;;  %s696_s16 = int_to_ptr.vmem [resolvable:$true] %s695_s16 }
 0x491   :  { %s926_s2 = scalar_lea.vmem %s696_s16, 16  ;;  %s930_s12 = scalar_lea.vmem %s696_s16, 32 }
 0x492   :  { %p927_p4 = scmp.ne.s32.totalorder %s696_s16, %s926_s2  ;;  %p931_p5 = scmp.lt.s32.totalorder %s696_s16, %s696_s16 }
 0x493   :  { %p932_p6 = scmp.lt.s32.totalorder %s930_s12, %s926_s2 }
 0x495   :  { %p933_p7 = por %p932_p6, %p931_p5 }
 0x497   :  { %p934_p8 = pnand %p933_p7, %p927_p4 }
 0x513   :  { %v665_v35 = vpop.xlane.xlu0 %664 }
 0x514   :  { %v666_v36 = vrot.slane %v665_v35, 4 }
 0x516   :  { %v667_v37 = vadd.f32 %v666_v36, %v665_v35 }
 0x518   :  { %v668_v38 = vrot.slane %v667_v37, 2 }
 0x51a   :  { %v669_v39 = vadd.f32 %v668_v38, %v667_v37 }
 0x51c   :  { %v670_v41 = vrot.slane %v669_v39, 1 }
 0x51e   :  { %v671_v42 = vadd.f32 %v670_v41, %v669_v39 }
 0x520   :  { %787 = vpush %v671_v42 }
 0x551   :  { %s788_s5 = spop %787 }
 0x552   :  { %v673_v43 = vstv %s788_s5 }
 0x553   :  { %v675_v44 = vmul.f32 0.125, %v673_v43 }
 0x555   :  { %v676_v45 = vsub.f32 0.0, %v675_v44 }
 0x557   :  { %678 = vst.msk [vmem:[#allocation9] sm:$0x1] %vm677_vm11, %v676_v45 }
 0x558   :  { %937 = shalt.err (!%p934_p8)
}
 0x559   :  { %s938_s20 = scalar_lea.hbm %s1195_s13, 16 }
 0x55a   :  { %p939_p9 = scmp.ne.s32.totalorder %s1195_s13, %s938_s20  ;;  %p942_p10 = scmp.lt.u32.totalorder %s938_s20, %s1195_s13 }
 0x55c   :  { %p944_p11 = pnand %p942_p10, %p939_p9 }
 0x55e   :  { %947 = shalt.err (!%p944_p11)
}
 0x55f   :  { %698 = dma.vmem_to_hbm [thread:$0]  %s696_s16, 16, %s1195_s13, [#allocation10]  }
 0x560   :  { %952 = dma.done.wait [#allocation4], 32  }
 0x561   :  { %953 = vsyncadd [#allocation4], 4294967264 }
 0x562   :  { %954 = dma.done.wait [#allocation10], 16  }
 0x563   :  { %955 = vsyncadd [#allocation10], 4294967280 }
 0x564   :  { %705 = vsyncpa [#allocation3], 1 }
 0x565   :  { %706 = vsyncpa [#allocation6], 1 }
 0x566   :  { %707 = vsyncpa [#allocation4], 1 }
 0x567   :  { %708 = vsyncpa [#allocation10], 1 }

</bundles_post_ra>
